<compile_context>
chip_gen: v7x
topology: tpu7x:2x2x1
jax: 0.10.0
libtpu: 0.0.40
codegen_flags: <defaults>
</compile_context>

<pallas_src>
import functools
import random

import numpy as np
import jax
import jax.numpy as jnp
from jax.experimental import pallas as pl
from jax.experimental.pallas import tpu as pltpu

LANE = 128
MAX_LANE_WIDTH = 4096                    # wide lane-dense last dim
TARGET_BLOCK_BYTES = 2 * 1024 * 1024     # ~2 MiB per block buffer


def _choose_layout(n_elems, itemsize):
    """Pick a lane-dense 2-D slab (rows_padded, w) and a row-block size tile_r."""
    sub = {4: 8, 2: 16, 1: 32}.get(itemsize, 8)      # min sublane tile per dtype
    w = LANE
    while w * 2 <= MAX_LANE_WIDTH and n_elems >= w * 2 * sub:
        w *= 2
    rows = -(-n_elems // w)
    target_rows = max(sub, (TARGET_BLOCK_BYTES // itemsize) // w)
    target_rows = (target_rows // sub) * sub
    tile_r = min(target_rows, ((rows + sub - 1) // sub) * sub)
    rows_padded = ((rows + tile_r - 1) // tile_r) * tile_r
    return w, tile_r, rows_padded


def _crop_kernel(starts_ref, x_ref, o_ref, *, crop_size, feat):
    """Zero every element whose dim-0 index falls inside any crop interval."""
    tile_r, w = x_ref.shape
    base = pl.program_id(0) * (tile_r * w)
    flat_idx = (base
                + jax.lax.broadcasted_iota(jnp.int32, (tile_r, w), 0) * w
                + jax.lax.broadcasted_iota(jnp.int32, (tile_r, w), 1))
    dim0 = flat_idx // feat if feat > 1 else flat_idx

    keep = jnp.ones((tile_r, w), dtype=jnp.bool_)
    # `times` is a small static number -> fully unrolled cheap SMEM scalar reads.
    for t in range(starts_ref.shape[0]):
        s = starts_ref[t]
        keep = keep & jnp.logical_not((dim0 >= s) & (dim0 < s + crop_size))

    x = x_ref[...]
    o_ref[...] = jnp.where(keep, x, jnp.zeros_like(x))


@functools.partial(
    jax.jit, static_argnames=("crop_size", "feat", "w", "tile_r", "rows_padded"))
def _crop_core(signal, starts, *, crop_size, feat, w, tile_r, rows_padded):
    orig_shape = signal.shape
    n = signal.size                       # static Python int (fixes prior crash)
    flat = signal.reshape(-1)
    pad = rows_padded * w - n
    if pad:                               # only for awkward lengths; tiny copy
        flat = jnp.pad(flat, (0, pad))
    x2d = flat.reshape(rows_padded, w)

    out2d = pl.pallas_call(
        functools.partial(_crop_kernel, crop_size=crop_size, feat=feat),
        out_shape=jax.ShapeDtypeStruct((rows_padded, w), x2d.dtype),
        grid_spec=pltpu.PrefetchScalarGridSpec(
            num_scalar_prefetch=1,
            grid=(rows_padded // tile_r,),
            in_specs=[pl.BlockSpec((tile_r, w), lambda i, starts: (i, 0))],
            out_specs=pl.BlockSpec((tile_r, w), lambda i, starts: (i, 0)),
        ),
        compiler_params=pltpu.CompilerParams(
            dimension_semantics=("parallel",),
            vmem_limit_bytes=32 * 1024 * 1024,
        ),
    )(starts, x2d)

    return out2d.reshape(-1)[:n].reshape(orig_shape)


def TakeDice(p):
    # Host-side Python dice, exactly as in the reference (no device sync).
    return random.random() < p


class RandomCrop:
    """Pallas TPU equivalent of the PyTorch RandomCrop module."""

    def __init__(self, crop_size, times=100, p=1.0):
        self.crop_size = int(crop_size)
        self.times = times
        self.p = p
        self.last_intervals = None        # exposed for testing

    def generate_random_intervals(self, a, b, L, N, intervals=None):
        if N * L > b - a:
            raise ValueError("interval range cannot hold all non-overlapping intervals")
        # (original had a mutable-default arg; use a fresh list per call)
        intervals = [] if intervals is None else intervals
        while len(intervals) < N:
            start = random.randint(a, b - L)
            if any(start < end and start + L > begin for begin, end in intervals):
                continue
            intervals.append((start, start + L))
        return sorted(intervals)

    def __call__(self, signal):
        if not TakeDice(self.p):
            return signal                 # early return, no kernel launch
        intervals = self.generate_random_intervals(
            0, signal.shape[0] - 1, self.crop_size, self.times)
        self.last_intervals = intervals
        starts = jnp.asarray([s for s, _ in intervals], dtype=jnp.int32)

        feat = int(np.prod(signal.shape[1:])) if signal.ndim > 1 else 1
        w, tile_r, rows_padded = _choose_layout(signal.size, signal.dtype.itemsize)
        return _crop_core(signal, starts,
                          crop_size=self.crop_size, feat=feat,
                          w=w, tile_r=tile_r, rows_padded=rows_padded)


if __name__ == "__main__":
    random.seed(0)                        # deterministic host-side dice / intervals
    key = jax.random.PRNGKey(0)

    # small 1-D signal (what `signal[start:end] = 0` / len(signal) implies)
    N = 8192
    x = jax.random.normal(key, (N,), dtype=jnp.float32)

    aug = RandomCrop(crop_size=16, times=8, p=1.0)   # p=1 so the kernel always runs
    out = jax.block_until_ready(aug(x))

    # pure numpy reference using the exact same intervals
    ref = np.asarray(x).copy()
    for s, e in aug.last_intervals:
        ref[s:e] = 0.0

    assert out.shape == x.shape and out.dtype == x.dtype
    assert np.array_equal(np.asarray(out), ref)
    print("KERNEL_OK")
</pallas_src>

<mosaic_0001>
module attributes {stable_mosaic.version = 11 : i64} {
  func.func @_crop_kernel(%arg0: i32, %arg1: memref<8xi32, #tpu.memory_space<smem>>, %arg2: memref<8x1024xf32, #tpu.memory_space<vmem>>, %arg3: memref<8x1024xf32, #tpu.memory_space<vmem>>) attributes {dimension_semantics = [#tpu.dimension_semantics<parallel>], iteration_bounds = array<i64: 1>, scalar_prefetch = 1 : i64, scratch_operands = 0 : i64, tpu.core_type = #tpu.core_type<tc>, window_params = [{transform_indices = @transform_0, window_bounds = array<i64: 8, 1024>}, {transform_indices = @transform_1, window_bounds = array<i64: 8, 1024>}]} {
    %c8192_i32 = arith.constant 8192 : i32
    %0 = arith.muli %arg0, %c8192_i32 : i32
    %1 = tpu.iota {dimensions = array<i32: 0>} : vector<8x1024xi32>
    %c1024_i32 = arith.constant 1024 : i32
    %2 = vector.broadcast %c1024_i32 : i32 to vector<8x1024xi32>
    %3 = arith.muli %1, %2 : vector<8x1024xi32>
    %4 = vector.broadcast %0 : i32 to vector<8x1024xi32>
    %5 = arith.addi %4, %3 : vector<8x1024xi32>
    %6 = tpu.iota {dimensions = array<i32: 1>} : vector<8x1024xi32>
    %7 = arith.addi %5, %6 : vector<8x1024xi32>
    %true = arith.constant true
    %8 = vector.broadcast %true : i1 to vector<8x1024xi1>
    %c0 = arith.constant 0 : index
    %9 = memref.load %arg1[%c0] : memref<8xi32, #tpu.memory_space<smem>>
    %10 = vector.broadcast %9 : i32 to vector<8x1024xi32>
    %11 = arith.cmpi sge, %7, %10 : vector<8x1024xi32>
    %c16_i32 = arith.constant 16 : i32
    %12 = arith.addi %9, %c16_i32 : i32
    %13 = vector.broadcast %12 : i32 to vector<8x1024xi32>
    %14 = arith.cmpi slt, %7, %13 : vector<8x1024xi32>
    %15 = arith.andi %11, %14 : vector<8x1024xi1>
    %cst = arith.constant dense<true> : vector<8x1024xi1>
    %16 = arith.xori %15, %cst : vector<8x1024xi1>
    %17 = arith.andi %8, %16 : vector<8x1024xi1>
    %c1 = arith.constant 1 : index
    %18 = memref.load %arg1[%c1] : memref<8xi32, #tpu.memory_space<smem>>
    %19 = vector.broadcast %18 : i32 to vector<8x1024xi32>
    %20 = arith.cmpi sge, %7, %19 : vector<8x1024xi32>
    %c16_i32_0 = arith.constant 16 : i32
    %21 = arith.addi %18, %c16_i32_0 : i32
    %22 = vector.broadcast %21 : i32 to vector<8x1024xi32>
    %23 = arith.cmpi slt, %7, %22 : vector<8x1024xi32>
    %24 = arith.andi %20, %23 : vector<8x1024xi1>
    %cst_1 = arith.constant dense<true> : vector<8x1024xi1>
    %25 = arith.xori %24, %cst_1 : vector<8x1024xi1>
    %26 = arith.andi %17, %25 : vector<8x1024xi1>
    %c2 = arith.constant 2 : index
    %27 = memref.load %arg1[%c2] : memref<8xi32, #tpu.memory_space<smem>>
    %28 = vector.broadcast %27 : i32 to vector<8x1024xi32>
    %29 = arith.cmpi sge, %7, %28 : vector<8x1024xi32>
    %c16_i32_2 = arith.constant 16 : i32
    %30 = arith.addi %27, %c16_i32_2 : i32
    %31 = vector.broadcast %30 : i32 to vector<8x1024xi32>
    %32 = arith.cmpi slt, %7, %31 : vector<8x1024xi32>
    %33 = arith.andi %29, %32 : vector<8x1024xi1>
    %cst_3 = arith.constant dense<true> : vector<8x1024xi1>
    %34 = arith.xori %33, %cst_3 : vector<8x1024xi1>
    %35 = arith.andi %26, %34 : vector<8x1024xi1>
    %c3 = arith.constant 3 : index
    %36 = memref.load %arg1[%c3] : memref<8xi32, #tpu.memory_space<smem>>
    %37 = vector.broadcast %36 : i32 to vector<8x1024xi32>
    %38 = arith.cmpi sge, %7, %37 : vector<8x1024xi32>
    %c16_i32_4 = arith.constant 16 : i32
    %39 = arith.addi %36, %c16_i32_4 : i32
    %40 = vector.broadcast %39 : i32 to vector<8x1024xi32>
    %41 = arith.cmpi slt, %7, %40 : vector<8x1024xi32>
    %42 = arith.andi %38, %41 : vector<8x1024xi1>
    %cst_5 = arith.constant dense<true> : vector<8x1024xi1>
    %43 = arith.xori %42, %cst_5 : vector<8x1024xi1>
    %44 = arith.andi %35, %43 : vector<8x1024xi1>
    %c4 = arith.constant 4 : index
    %45 = memref.load %arg1[%c4] : memref<8xi32, #tpu.memory_space<smem>>
    %46 = vector.broadcast %45 : i32 to vector<8x1024xi32>
    %47 = arith.cmpi sge, %7, %46 : vector<8x1024xi32>
    %c16_i32_6 = arith.constant 16 : i32
    %48 = arith.addi %45, %c16_i32_6 : i32
    %49 = vector.broadcast %48 : i32 to vector<8x1024xi32>
    %50 = arith.cmpi slt, %7, %49 : vector<8x1024xi32>
    %51 = arith.andi %47, %50 : vector<8x1024xi1>
    %cst_7 = arith.constant dense<true> : vector<8x1024xi1>
    %52 = arith.xori %51, %cst_7 : vector<8x1024xi1>
    %53 = arith.andi %44, %52 : vector<8x1024xi1>
    %c5 = arith.constant 5 : index
    %54 = memref.load %arg1[%c5] : memref<8xi32, #tpu.memory_space<smem>>
    %55 = vector.broadcast %54 : i32 to vector<8x1024xi32>
    %56 = arith.cmpi sge, %7, %55 : vector<8x1024xi32>
    %c16_i32_8 = arith.constant 16 : i32
    %57 = arith.addi %54, %c16_i32_8 : i32
    %58 = vector.broadcast %57 : i32 to vector<8x1024xi32>
    %59 = arith.cmpi slt, %7, %58 : vector<8x1024xi32>
    %60 = arith.andi %56, %59 : vector<8x1024xi1>
    %cst_9 = arith.constant dense<true> : vector<8x1024xi1>
    %61 = arith.xori %60, %cst_9 : vector<8x1024xi1>
    %62 = arith.andi %53, %61 : vector<8x1024xi1>
    %c6 = arith.constant 6 : index
    %63 = memref.load %arg1[%c6] : memref<8xi32, #tpu.memory_space<smem>>
    %64 = vector.broadcast %63 : i32 to vector<8x1024xi32>
    %65 = arith.cmpi sge, %7, %64 : vector<8x1024xi32>
    %c16_i32_10 = arith.constant 16 : i32
    %66 = arith.addi %63, %c16_i32_10 : i32
    %67 = vector.broadcast %66 : i32 to vector<8x1024xi32>
    %68 = arith.cmpi slt, %7, %67 : vector<8x1024xi32>
    %69 = arith.andi %65, %68 : vector<8x1024xi1>
    %cst_11 = arith.constant dense<true> : vector<8x1024xi1>
    %70 = arith.xori %69, %cst_11 : vector<8x1024xi1>
    %71 = arith.andi %62, %70 : vector<8x1024xi1>
    %c7 = arith.constant 7 : index
    %72 = memref.load %arg1[%c7] : memref<8xi32, #tpu.memory_space<smem>>
    %73 = vector.broadcast %72 : i32 to vector<8x1024xi32>
    %74 = arith.cmpi sge, %7, %73 : vector<8x1024xi32>
    %c16_i32_12 = arith.constant 16 : i32
    %75 = arith.addi %72, %c16_i32_12 : i32
    %76 = vector.broadcast %75 : i32 to vector<8x1024xi32>
    %77 = arith.cmpi slt, %7, %76 : vector<8x1024xi32>
    %78 = arith.andi %74, %77 : vector<8x1024xi1>
    %cst_13 = arith.constant dense<true> : vector<8x1024xi1>
    %79 = arith.xori %78, %cst_13 : vector<8x1024xi1>
    %80 = arith.andi %71, %79 : vector<8x1024xi1>
    %c0_14 = arith.constant 0 : index
    %c0_15 = arith.constant 0 : index
    %81 = vector.load %arg2[%c0_14, %c0_15] : memref<8x1024xf32, #tpu.memory_space<vmem>>, vector<8x1024xf32>
    %cst_16 = arith.constant 0.000000e+00 : f32
    %82 = vector.broadcast %cst_16 : f32 to vector<8x1024xf32>
    %83 = arith.select %80, %81, %82 : vector<8x1024xi1>, vector<8x1024xf32>
    %c0_17 = arith.constant 0 : index
    %c0_18 = arith.constant 0 : index
    %84 = vector.load %arg3[%c0_17, %c0_18] : memref<8x1024xf32, #tpu.memory_space<vmem>>, vector<8x1024xf32>
    tpu.vector_store %arg3[%c0_17, %c0_18], %83 {strides = array<i32>} : memref<8x1024xf32, #tpu.memory_space<vmem>>, vector<8x1024xf32>,
    return
  }
  func.func @transform_0(%arg0: i32, %arg1: memref<8xi32, #tpu.memory_space<smem>>) -> (i32, i32) {
    %c0_i32 = arith.constant 0 : i32
    %c0_i32_0 = arith.constant 0 : i32
    return %arg0, %c0_i32 : i32, i32
  }
  func.func @transform_1(%arg0: i32, %arg1: memref<8xi32, #tpu.memory_space<smem>>) -> (i32, i32) {
    %c0_i32 = arith.constant 0 : i32
    %c0_i32_0 = arith.constant 0 : i32
    return %arg0, %c0_i32 : i32, i32
  }
}

</mosaic_0001>

<bundles_post_ra>
// kernel: _crop_core.1
= control target key start
LH: loop header
LB: loop body
LE: loop exit
PB: predicated region body
PF: predicated region fallthrough
CT: control target
= control target key end

     0   :  { %s1249_s0 = inlined_call_operand.vmem [shape: s32[8], index: 0, kind: input, shape index: {}]   ;;  %s1250_s1 = inlined_call_operand.vmem [shape: f32[8,1024], index: 1, kind: input, shape index: {}]   ;;  %s1251_s2 = inlined_call_operand.vmem [shape: f32[8,1024], index: 2, kind: output, shape index: {}]  }
   0x1   :  { %s7_s11 = sshll.u32 %s1249_s0, 4  ;;  %s8_s11 = int_to_ptr.vmem [resolvable:$true] %s7_s11 }
   0x2   :  { %s419_s12 = scalar_lea.vmem %s8_s11, 16  ;;  %p424_p1 = scmp.lt.s32.totalorder %s8_s11, %s8_s11 }
   0x3   :  { %p420_p0 = scmp.ne.s32.totalorder %s8_s11, %s419_s12  ;;  %p425_p2 = scmp.lt.s32.totalorder %s419_s12, %s419_s12 }
   0x5   :  { %p426_p3 = por %p425_p2, %p424_p1 }
   0x7   :  { %p427_p4 = pnand %p426_p3, %p420_p0 }
   0x9   :  { %430 = shalt.err (!%p427_p4)  }
   0xa   :  { %s433_s13 = smov [#allocation3]  }
   0xb   :  { %10 = dma.vmem_to_smem %s8_s11, 16, %s433_s13, [#allocation2] }
   0xc   :  { %431 = dma.done.wait [#allocation2], 16 }
   0xd   :  { %432 = vsyncadd [#allocation2], 4294967280 }
   0xe   :  { %12 = sfence }
   0xf   :  { %v16_v0 = vlaneseq  ;;  %s38_s14 = sld [smem:[#allocation3]]  ;;  %s410_s15 = sld [smem:[#allocation3 + $0x1]]  ;;  %vm434_vm5 = vmmov 1   ;;  %v382_v38 = vld [vmem:[%s1250_s1] sm:$0xff]  ;;  %v383_v48 = vld [vmem:[%s1250_s1 + $0x8] sm:$0xff]  ;;  %v384_v51 = vld [vmem:[%s1250_s1 + $0x10] sm:$0xff] }
  0x10   :  { %s411_s16 = sld [smem:[#allocation3 + $0x2]]  ;;  %s453_s17 = sld [smem:[#allocation3 + $0x3]]  ;;  %v385_v53 = vld [vmem:[%s1250_s1 + $0x18] sm:$0xff]  ;;  %v386_v55 = vld [vmem:[%s1250_s1 + $0x20] sm:$0xff]  ;;  %v387_v57 = vld [vmem:[%s1250_s1 + $0x28] sm:$0xff] }
  0x11   :  { %v17_v1 = vshrl.u32 %v16_v0, 7  ;;  %s455_s0 = sld [smem:[#allocation3 + $0x4]]  ;;  %v459_v3 = vand.u32 127, %v16_v0  ;;  %s461_s18 = sld [smem:[#allocation3 + $0x5]]  ;;  %v388_v59 = vld [vmem:[%s1250_s1 + $0x30] sm:$0xff]  ;;  %v389_v61 = vld [vmem:[%s1250_s1 + $0x38] sm:$0xff] }
  0x12   :  { %s477_s22 = sld [smem:[#allocation3 + $0x6]]  ;;  %s488_s24 = sld [smem:[#allocation3 + $0x7]] }
  0x13   :  { %v457_v2 = vmul.u32 1024, %v17_v1  ;;  %v23_v15 = vadd.s32 128, %v459_v3  ;;  %v25_v16 = vadd.s32 384, %v459_v3  ;;  %v26_v19 = vadd.s32 512, %v459_v3 }
  0x14   :  { %v27_v20 = vadd.s32 640, %v459_v3  ;;  %v28_v21 = vadd.s32 768, %v459_v3  ;;  %v29_v43 = vadd.s32 896, %v459_v3  ;;  %v24_v45 = vadd.s32 256, %v459_v3 }
  0x15   :  { %v465_v4 = vadd.s32 %v459_v3, %v457_v2  ;;  %v467_v5 = vstv %s38_s14  ;;  %s48_s19 = sadd.s32 16, %s38_s14  ;;  %v469_v6 = vstv %s410_s15  ;;  %s84_s20 = sadd.s32 16, %s410_s15  ;;  %v539_v23 = vadd.s32 %v23_v15, %v457_v2 }
  0x16   :  { %v471_v7 = vstv %s48_s19  ;;  %v473_v8 = vstv %s84_s20  ;;  %v475_v9 = vstv %s411_s16  ;;  %s128_s21 = sadd.s32 16, %s411_s16  ;;  %s172_s23 = sadd.s32 16, %s453_s17  ;;  %v502_v12 = vstv %s453_s17 }
  0x17   :  { %vm40_vm0 = vcmp.ge.s32.totalorder %v465_v4, %v467_v5  ;;  %vm50_vm1 = vcmp.lt.s32.totalorder %v465_v4, %v471_v7  ;;  %vm76_vm2 = vcmp.ge.s32.totalorder %v465_v4, %v469_v6  ;;  %vm86_vm3 = vcmp.lt.s32.totalorder %v465_v4, %v473_v8  ;;  %s216_s25 = sadd.s32 16, %s455_s0  ;;  %s260_s26 = sadd.s32 16, %s461_s18 }
  0x18   :  { %vm58_vm4 = vmand %vm40_vm0, %vm50_vm1  ;;  %v490_v10 = vstv %s128_s21  ;;  %vm120_vm8 = vcmp.ge.s32.totalorder %v465_v4, %v475_v9  ;;  %v504_v13 = vstv %s172_s23  ;;  %vm164_vm13 = vcmp.ge.s32.totalorder %v465_v4, %v502_v12  ;;  %s304_s27 = sadd.s32 16, %s477_s22  ;;  %s348_s28 = sadd.s32 16, %s488_s24 }
  0x19   :  { %vm493_vm6 = vmxor %vm58_vm4, %vm434_vm5  ;;  %vm130_vm9 = vcmp.lt.s32.totalorder %v465_v4, %v490_v10  ;;  %vm174_vm14 = vcmp.lt.s32.totalorder %v465_v4, %v504_v13  ;;  %v523_v17 = vstv %s455_s0  ;;  %v525_v18 = vstv %s216_s25 }
  0x1a   :  { %vm94_vm7 = vmand %vm76_vm2, %vm86_vm3  ;;  %vm208_vm2 = vcmp.ge.s32.totalorder %v465_v4, %v523_v17  ;;  %vm218_vm3 = vcmp.lt.s32.totalorder %v465_v4, %v525_v18  ;;  %v546_v24 = vstv %s461_s18  ;;  %v548_v25 = vstv %s260_s26 }
  0x1b   :  { %vm508_vm10 = vmxor %vm94_vm7, %vm434_vm5  ;;  %v556_v27 = vstv %s477_s22  ;;  %v558_v28 = vstv %s304_s27  ;;  %v561_v29 = vstv %s488_s24  ;;  %v564_v30 = vadd.s32 %v25_v16, %v457_v2 }
  0x1c   :  { %vm110_vm11 = vmand %vm493_vm6, %vm508_vm10  ;;  %v570_v31 = vstv %s348_s28  ;;  %v573_v32 = vadd.s32 %v26_v19, %v457_v2  ;;  %v576_v33 = vadd.s32 %v27_v20, %v457_v2  ;;  %v579_v34 = vadd.s32 %v28_v21, %v457_v2 }
  0x1d   :  { %vm138_vm12 = vmand %vm120_vm8, %vm130_vm9  ;;  %vm252_vm8 = vcmp.ge.s32.totalorder %v465_v4, %v546_v24  ;;  %vm262_vm9 = vcmp.lt.s32.totalorder %v465_v4, %v548_v25  ;;  %v839_v44 = vadd.s32 %v29_v43, %v457_v2  ;;  %v32_v47 = vadd.s32 %v24_v45, %v457_v2 }
  0x1e   :  { %vm146_vm15 = vmxor %vm138_vm12, %vm434_vm5  ;;  %vm296_vm12 = vcmp.ge.s32.totalorder %v465_v4, %v556_v27 }
  0x1f   :  { %vm533_vm0 = vmand %vm110_vm11, %vm146_vm15  ;;  %vm350_vm15 = vcmp.lt.s32.totalorder %v465_v4, %v570_v31 }
  0x20   :  { %vm182_vm1 = vmand %vm164_vm13, %vm174_vm14  ;;  %vm306_vm13 = vcmp.lt.s32.totalorder %v465_v4, %v558_v28  ;;  %vm340_vm14 = vcmp.ge.s32.totalorder %v465_v4, %v561_v29 }
  0x21   :  { %vm551_vm4 = vmxor %vm182_vm1, %vm434_vm5  ;;  %vm220_vm1 = vcmp.lt.s32.totalorder %v32_v47, %v525_v18 }
  0x22   :  { %vm198_vm6 = vmand %vm533_vm0, %vm551_vm4 }
  0x23   :  { %vm226_vm7 = vmand %vm208_vm2, %vm218_vm3  ;;  %vm51_vm2 = vcmp.lt.s32.totalorder %v539_v23, %v471_v7  ;;  %vm131_vm3 = vcmp.lt.s32.totalorder %v539_v23, %v490_v10 }
  0x24   :  { %vm234_vm10 = vmxor %vm226_vm7, %vm434_vm5 }
  0x25   :  { %vm586_vm11 = vmand %vm198_vm6, %vm234_vm10 }
  0x26   :  { %vm270_vm0 = vmand %vm252_vm8, %vm262_vm9 }
  0x27   :  { %vm607_vm6 = vmxor %vm270_vm0, %vm434_vm5 }
  0x28   :  { %vm286_vm0 = vmand %vm586_vm11, %vm607_vm6  ;;  %vm165_vm6 = vcmp.ge.s32.totalorder %v539_v23, %v502_v12 }
  0x29   :  { %vm314_vm10 = vmand %vm296_vm12, %vm306_vm13 }
  0x2a   :  { %vm322_vm12 = vmxor %vm314_vm10, %vm434_vm5 }
  0x2b   :  { %vm663_vm9 = vmand %vm286_vm0, %vm322_vm12  ;;  %vm175_vm0 = vcmp.lt.s32.totalorder %v539_v23, %v504_v13  ;;  %vm1266_vm12 = vcmp.ge.s32.totalorder %v539_v23, %v467_v5 }
  0x2c   :  { %vm358_vm11 = vmand %vm340_vm14, %vm350_vm15  ;;  %vm1269_vm14 = vcmp.lt.s32.totalorder %v539_v23, %v473_v8 }
  0x2d   :  { %vm366_vm15 = vmxor %vm358_vm11, %vm434_vm5 }
  0x2e   :  { %vm374_vm8 = vmand %vm663_vm9, %vm366_vm15 }
  0x2f   :  { %v390_v39 = vsel %vm374_vm8, %v382_v38, 0.0  ;;  %vm59_vm9 = vmand %vm1266_vm12, %vm51_vm2  ;;  %vm1273_vm12 = vcmp.ge.s32.totalorder %v539_v23, %v475_v9 }
  0x30   :  { %398 = vst [vmem:[%s1251_s2] sm:$0xff] %v390_v39  ;;  %vm731_vm8 = vmxor %vm59_vm9, %vm434_vm5  ;;  %vm1270_vm9 = vcmp.ge.s32.totalorder %v539_v23, %v469_v6 }
  0x31   :  { %vm95_vm13 = vmand %vm1270_vm9, %vm1269_vm14 }
  0x32   :  { %vm758_vm10 = vmxor %vm95_vm13, %vm434_vm5 }
  0x33   :  { %vm111_vm13 = vmand %vm731_vm8, %vm758_vm10  ;;  %vm209_vm8 = vcmp.ge.s32.totalorder %v539_v23, %v523_v17 }
  0x34   :  { %vm139_vm11 = vmand %vm1273_vm12, %vm131_vm3  ;;  %vm263_vm12 = vcmp.lt.s32.totalorder %v539_v23, %v548_v25 }
  0x35   :  { %vm147_vm2 = vmxor %vm139_vm11, %vm434_vm5 }
  0x36   :  { %vm810_vm9 = vmand %vm111_vm13, %vm147_vm2  ;;  %vm219_vm2 = vcmp.lt.s32.totalorder %v539_v23, %v525_v18 }
  0x37   :  { %vm183_vm10 = vmand %vm165_vm6, %vm175_vm0  ;;  %vm253_vm0 = vcmp.ge.s32.totalorder %v539_v23, %v546_v24 }
  0x38   :  { %vm191_vm15 = vmxor %vm183_vm10, %vm434_vm5 }
  0x39   :  { %vm199_vm3 = vmand %vm810_vm9, %vm191_vm15  ;;  %vm297_vm15 = vcmp.ge.s32.totalorder %v539_v23, %v556_v27  ;;  %vm307_vm9 = vcmp.lt.s32.totalorder %v539_v23, %v558_v28 }
  0x3a   :  { %vm227_vm6 = vmand %vm209_vm8, %vm219_vm2 }
  0x3b   :  { %vm235_vm13 = vmxor %vm227_vm6, %vm434_vm5  ;;  %vm351_vm6 = vcmp.lt.s32.totalorder %v539_v23, %v570_v31 }
  0x3c   :  { %vm855_vm2 = vmand %vm199_vm3, %vm235_vm13  ;;  %vm166_vm13 = vcmp.ge.s32.totalorder %v32_v47, %v502_v12 }
  0x3d   :  { %vm271_vm10 = vmand %vm253_vm0, %vm263_vm12  ;;  %vm341_vm0 = vcmp.ge.s32.totalorder %v539_v23, %v561_v29 }
  0x3e   :  { %vm279_vm4 = vmxor %vm271_vm10, %vm434_vm5 }
  0x3f   :  { %vm287_vm11 = vmand %vm855_vm2, %vm279_vm4  ;;  %vm42_vm4 = vcmp.ge.s32.totalorder %v32_v47, %v467_v5  ;;  %vm122_vm2 = vcmp.ge.s32.totalorder %v32_v47, %v475_v9 }
  0x40   :  { %vm315_vm12 = vmand %vm297_vm15, %vm307_vm9  ;;  %vm52_vm15 = vcmp.lt.s32.totalorder %v32_v47, %v471_v7 }
  0x41   :  { %vm323_vm10 = vmxor %vm315_vm12, %vm434_vm5  ;;  %vm254_vm12 = vcmp.ge.s32.totalorder %v32_v47, %v546_v24 }
  0x42   :  { %vm331_vm8 = vmand %vm287_vm11, %vm323_vm10  ;;  %vm78_vm11 = vcmp.ge.s32.totalorder %v32_v47, %v469_v6 }
  0x43   :  { %vm359_vm14 = vmand %vm341_vm0, %vm351_vm6  ;;  %vm88_vm6 = vcmp.lt.s32.totalorder %v32_v47, %v473_v8 }
  0x44   :  { %vm367_vm9 = vmxor %vm359_vm14, %vm434_vm5 }
  0x45   :  { %vm375_vm3 = vmand %vm331_vm8, %vm367_vm9 }
  0x46   :  { %v391_v49 = vsel %vm375_vm3, %v383_v48, 0.0  ;;  %vm60_vm0 = vmand %vm42_vm4, %vm52_vm15  ;;  %vm132_vm3 = vcmp.lt.s32.totalorder %v32_v47, %v490_v10 }
  0x47   :  { %399 = vst [vmem:[%s1251_s2 + $0x8] sm:$0xff] %v391_v49  ;;  %vm900_vm10 = vmxor %vm60_vm0, %vm434_vm5 }
  0x48   :  { %vm96_vm9 = vmand %vm78_vm11, %vm88_vm6  ;;  %vm176_vm11 = vcmp.lt.s32.totalorder %v32_v47, %v504_v13 }
  0x49   :  { %vm104_vm4 = vmxor %vm96_vm9, %vm434_vm5  ;;  %vm210_vm9 = vcmp.ge.s32.totalorder %v32_v47, %v523_v17 }
  0x4a   :  { %vm112_vm15 = vmand %vm900_vm10, %vm104_vm4 }
  0x4b   :  { %vm140_vm14 = vmand %vm122_vm2, %vm132_vm3  ;;  %vm264_vm2 = vcmp.lt.s32.totalorder %v32_v47, %v548_v25 }
  0x4c   :  { %vm148_vm6 = vmxor %vm140_vm14, %vm434_vm5 }
  0x4d   :  { %vm156_vm8 = vmand %vm112_vm15, %vm148_vm6  ;;  %vm298_vm15 = vcmp.ge.s32.totalorder %v32_v47, %v556_v27 }
  0x4e   :  { %vm184_vm7 = vmand %vm166_vm13, %vm176_vm11  ;;  %vm308_vm13 = vcmp.lt.s32.totalorder %v32_v47, %v558_v28 }
  0x4f   :  { %vm192_vm10 = vmxor %vm184_vm7, %vm434_vm5 }
  0x50   :  { %vm200_vm4 = vmand %vm156_vm8, %vm192_vm10  ;;  %vm342_vm10 = vcmp.ge.s32.totalorder %v32_v47, %v561_v29 }
  0x51   :  { %vm228_vm0 = vmand %vm210_vm9, %vm220_vm1  ;;  %vm352_vm1 = vcmp.lt.s32.totalorder %v32_v47, %v570_v31 }
  0x52   :  { %vm236_vm3 = vmxor %vm228_vm0, %vm434_vm5 }
  0x53   :  { %vm244_vm14 = vmand %vm200_vm4, %vm236_vm3 }
  0x54   :  { %vm272_vm6 = vmand %vm254_vm12, %vm264_vm2  ;;  %vm1280_vm2 = vcmp.lt.s32.totalorder %v564_v30, %v471_v7 }
  0x55   :  { %vm280_vm11 = vmxor %vm272_vm6, %vm434_vm5 }
  0x56   :  { %vm288_vm7 = vmand %vm244_vm14, %vm280_vm11  ;;  %vm1281_vm14 = vcmp.ge.s32.totalorder %v564_v30, %v467_v5  ;;  %vm1283_vm11 = vcmp.ge.s32.totalorder %v564_v30, %v469_v6 }
  0x57   :  { %vm316_vm8 = vmand %vm298_vm15, %vm308_vm13  ;;  %vm1282_vm13 = vcmp.lt.s32.totalorder %v564_v30, %v473_v8 }
  0x58   :  { %vm324_vm9 = vmxor %vm316_vm8, %vm434_vm5 }
  0x59   :  { %vm332_vm0 = vmand %vm288_vm7, %vm324_vm9  ;;  %vm1285_vm9 = vcmp.ge.s32.totalorder %v564_v30, %v475_v9 }
  0x5a   :  { %vm360_vm3 = vmand %vm342_vm10, %vm352_vm1  ;;  %vm1284_vm1 = vcmp.lt.s32.totalorder %v564_v30, %v490_v10 }
  0x5b   :  { %vm368_vm12 = vmxor %vm360_vm3, %vm434_vm5 }
  0x5c   :  { %vm376_vm4 = vmand %vm332_vm0, %vm368_vm12 }
  0x5d   :  { %v392_v52 = vsel %vm376_vm4, %v384_v51, 0.0  ;;  %vm61_vm6 = vmand %vm1281_vm14, %vm1280_vm2  ;;  %vm1286_vm4 = vcmp.lt.s32.totalorder %v564_v30, %v504_v13  ;;  %vm1287_vm2 = vcmp.ge.s32.totalorder %v564_v30, %v502_v12 }
  0x5e   :  { %400 = vst [vmem:[%s1251_s2 + $0x10] sm:$0xff] %v392_v52  ;;  %vm69_vm15 = vmxor %vm61_vm6, %vm434_vm5 }
  0x5f   :  { %vm97_vm7 = vmand %vm1283_vm11, %vm1282_vm13  ;;  %vm1288_vm13 = vcmp.lt.s32.totalorder %v564_v30, %v525_v18  ;;  %vm1289_vm11 = vcmp.ge.s32.totalorder %v564_v30, %v523_v17 }
  0x60   :  { %vm105_vm8 = vmxor %vm97_vm7, %vm434_vm5 }
  0x61   :  { %vm113_vm10 = vmand %vm69_vm15, %vm105_vm8 }
  0x62   :  { %vm141_vm0 = vmand %vm1285_vm9, %vm1284_vm1  ;;  %vm1290_vm1 = vcmp.lt.s32.totalorder %v564_v30, %v548_v25  ;;  %vm1291_vm9 = vcmp.ge.s32.totalorder %v564_v30, %v546_v24 }
  0x63   :  { %vm149_vm3 = vmxor %vm141_vm0, %vm434_vm5 }
  0x64   :  { %vm157_vm12 = vmand %vm113_vm10, %vm149_vm3 }
  0x65   :  { %vm185_vm14 = vmand %vm1287_vm2, %vm1286_vm4  ;;  %vm1292_vm4 = vcmp.lt.s32.totalorder %v564_v30, %v558_v28  ;;  %vm1293_vm2 = vcmp.ge.s32.totalorder %v564_v30, %v556_v27 }
  0x66   :  { %vm193_vm6 = vmxor %vm185_vm14, %vm434_vm5 }
  0x67   :  { %vm201_vm15 = vmand %vm157_vm12, %vm193_vm6 }
  0x68   :  { %vm229_vm7 = vmand %vm1289_vm11, %vm1288_vm13  ;;  %vm1294_vm13 = vcmp.lt.s32.totalorder %v564_v30, %v570_v31  ;;  %vm1295_vm11 = vcmp.ge.s32.totalorder %v564_v30, %v561_v29 }
  0x69   :  { %vm237_vm8 = vmxor %vm229_vm7, %vm434_vm5 }
  0x6a   :  { %vm245_vm10 = vmand %vm201_vm15, %vm237_vm8 }
  0x6b   :  { %vm273_vm0 = vmand %vm1291_vm9, %vm1290_vm1  ;;  %vm1296_vm1 = vcmp.lt.s32.totalorder %v573_v32, %v471_v7  ;;  %vm1297_vm9 = vcmp.ge.s32.totalorder %v573_v32, %v467_v5 }
  0x6c   :  { %vm281_vm3 = vmxor %vm273_vm0, %vm434_vm5 }
  0x6d   :  { %vm289_vm12 = vmand %vm245_vm10, %vm281_vm3 }
  0x6e   :  { %vm317_vm14 = vmand %vm1293_vm2, %vm1292_vm4  ;;  %vm1299_vm4 = vcmp.ge.s32.totalorder %v573_v32, %v469_v6 }
  0x6f   :  { %vm325_vm6 = vmxor %vm317_vm14, %vm434_vm5 }
  0x70   :  { %vm333_vm15 = vmand %vm289_vm12, %vm325_vm6  ;;  %vm1298_vm12 = vcmp.lt.s32.totalorder %v573_v32, %v473_v8 }
  0x71   :  { %vm361_vm7 = vmand %vm1295_vm11, %vm1294_vm13  ;;  %vm1301_vm13 = vcmp.ge.s32.totalorder %v573_v32, %v475_v9 }
  0x72   :  { %vm369_vm8 = vmxor %vm361_vm7, %vm434_vm5 }
  0x73   :  { %vm377_vm10 = vmand %vm333_vm15, %vm369_vm8  ;;  %vm1300_vm15 = vcmp.lt.s32.totalorder %v573_v32, %v490_v10 }
  0x74   :  { %v393_v54 = vsel %vm377_vm10, %v385_v53, 0.0  ;;  %vm62_vm0 = vmand %vm1297_vm9, %vm1296_vm1  ;;  %vm1302_vm10 = vcmp.lt.s32.totalorder %v573_v32, %v504_v13  ;;  %vm1303_vm1 = vcmp.ge.s32.totalorder %v573_v32, %v502_v12 }
  0x75   :  { %401 = vst [vmem:[%s1251_s2 + $0x18] sm:$0xff] %v393_v54  ;;  %vm70_vm3 = vmxor %vm62_vm0, %vm434_vm5 }
  0x76   :  { %vm98_vm2 = vmand %vm1299_vm4, %vm1298_vm12  ;;  %vm1304_vm12 = vcmp.lt.s32.totalorder %v573_v32, %v525_v18  ;;  %vm1305_vm4 = vcmp.ge.s32.totalorder %v573_v32, %v523_v17 }
  0x77   :  { %vm106_vm14 = vmxor %vm98_vm2, %vm434_vm5 }
  0x78   :  { %vm114_vm6 = vmand %vm70_vm3, %vm106_vm14 }
  0x79   :  { %vm142_vm11 = vmand %vm1301_vm13, %vm1300_vm15  ;;  %vm1306_vm15 = vcmp.lt.s32.totalorder %v573_v32, %v548_v25  ;;  %vm1307_vm13 = vcmp.ge.s32.totalorder %v573_v32, %v546_v24 }
  0x7a   :  { %vm150_vm7 = vmxor %vm142_vm11, %vm434_vm5 }
  0x7b   :  { %vm158_vm8 = vmand %vm114_vm6, %vm150_vm7 }
  0x7c   :  { %vm186_vm9 = vmand %vm1303_vm1, %vm1302_vm10  ;;  %vm1308_vm10 = vcmp.lt.s32.totalorder %v573_v32, %v558_v28  ;;  %vm1309_vm1 = vcmp.ge.s32.totalorder %v573_v32, %v556_v27 }
  0x7d   :  { %vm194_vm0 = vmxor %vm186_vm9, %vm434_vm5 }
  0x7e   :  { %vm202_vm3 = vmand %vm158_vm8, %vm194_vm0 }
  0x7f   :  { %vm230_vm2 = vmand %vm1305_vm4, %vm1304_vm12  ;;  %vm1310_vm12 = vcmp.lt.s32.totalorder %v573_v32, %v570_v31  ;;  %vm1311_vm4 = vcmp.ge.s32.totalorder %v573_v32, %v561_v29 }
  0x80   :  { %vm238_vm14 = vmxor %vm230_vm2, %vm434_vm5 }
  0x81   :  { %vm246_vm6 = vmand %vm202_vm3, %vm238_vm14 }
  0x82   :  { %vm274_vm11 = vmand %vm1307_vm13, %vm1306_vm15  ;;  %vm1312_vm15 = vcmp.lt.s32.totalorder %v576_v33, %v471_v7  ;;  %vm1313_vm13 = vcmp.ge.s32.totalorder %v576_v33, %v467_v5 }
  0x83   :  { %vm282_vm7 = vmxor %vm274_vm11, %vm434_vm5 }
  0x84   :  { %vm290_vm8 = vmand %vm246_vm6, %vm282_vm7 }
  0x85   :  { %vm318_vm9 = vmand %vm1309_vm1, %vm1308_vm10  ;;  %vm1315_vm10 = vcmp.ge.s32.totalorder %v576_v33, %v469_v6 }
  0x86   :  { %vm326_vm0 = vmxor %vm318_vm9, %vm434_vm5 }
  0x87   :  { %vm334_vm3 = vmand %vm290_vm8, %vm326_vm0  ;;  %vm1314_vm8 = vcmp.lt.s32.totalorder %v576_v33, %v473_v8 }
  0x88   :  { %vm362_vm2 = vmand %vm1311_vm4, %vm1310_vm12  ;;  %vm1317_vm12 = vcmp.ge.s32.totalorder %v576_v33, %v475_v9 }
  0x89   :  { %vm370_vm14 = vmxor %vm362_vm2, %vm434_vm5 }
  0x8a   :  { %vm378_vm6 = vmand %vm334_vm3, %vm370_vm14  ;;  %vm1316_vm3 = vcmp.lt.s32.totalorder %v576_v33, %v490_v10 }
  0x8b   :  { %v394_v56 = vsel %vm378_vm6, %v386_v55, 0.0  ;;  %vm63_vm11 = vmand %vm1313_vm13, %vm1312_vm15  ;;  %vm1318_vm6 = vcmp.lt.s32.totalorder %v576_v33, %v504_v13  ;;  %vm1319_vm15 = vcmp.ge.s32.totalorder %v576_v33, %v502_v12 }
  0x8c   :  { %402 = vst [vmem:[%s1251_s2 + $0x20] sm:$0xff] %v394_v56  ;;  %vm71_vm7 = vmxor %vm63_vm11, %vm434_vm5 }
  0x8d   :  { %vm99_vm1 = vmand %vm1315_vm10, %vm1314_vm8  ;;  %vm1320_vm8 = vcmp.lt.s32.totalorder %v576_v33, %v525_v18  ;;  %vm1321_vm10 = vcmp.ge.s32.totalorder %v576_v33, %v523_v17 }
  0x8e   :  { %vm107_vm9 = vmxor %vm99_vm1, %vm434_vm5 }
  0x8f   :  { %vm115_vm0 = vmand %vm71_vm7, %vm107_vm9 }
  0x90   :  { %vm143_vm4 = vmand %vm1317_vm12, %vm1316_vm3  ;;  %vm1322_vm3 = vcmp.lt.s32.totalorder %v576_v33, %v548_v25  ;;  %vm1323_vm12 = vcmp.ge.s32.totalorder %v576_v33, %v546_v24 }
  0x91   :  { %vm151_vm2 = vmxor %vm143_vm4, %vm434_vm5 }
  0x92   :  { %vm159_vm14 = vmand %vm115_vm0, %vm151_vm2 }
  0x93   :  { %vm187_vm13 = vmand %vm1319_vm15, %vm1318_vm6  ;;  %vm1324_vm6 = vcmp.lt.s32.totalorder %v576_v33, %v558_v28  ;;  %vm1325_vm15 = vcmp.ge.s32.totalorder %v576_v33, %v556_v27 }
  0x94   :  { %vm195_vm11 = vmxor %vm187_vm13, %vm434_vm5 }
  0x95   :  { %vm203_vm7 = vmand %vm159_vm14, %vm195_vm11 }
  0x96   :  { %vm231_vm1 = vmand %vm1321_vm10, %vm1320_vm8  ;;  %vm1326_vm8 = vcmp.lt.s32.totalorder %v576_v33, %v570_v31  ;;  %vm1327_vm10 = vcmp.ge.s32.totalorder %v576_v33, %v561_v29 }
  0x97   :  { %vm239_vm9 = vmxor %vm231_vm1, %vm434_vm5 }
  0x98   :  { %vm247_vm0 = vmand %vm203_vm7, %vm239_vm9 }
  0x99   :  { %vm275_vm4 = vmand %vm1323_vm12, %vm1322_vm3  ;;  %vm1328_vm3 = vcmp.lt.s32.totalorder %v579_v34, %v471_v7  ;;  %vm1329_vm12 = vcmp.ge.s32.totalorder %v579_v34, %v467_v5 }
  0x9a   :  { %vm283_vm2 = vmxor %vm275_vm4, %vm434_vm5 }
  0x9b   :  { %vm291_vm14 = vmand %vm247_vm0, %vm283_vm2 }
  0x9c   :  { %vm319_vm13 = vmand %vm1325_vm15, %vm1324_vm6  ;;  %vm1331_vm6 = vcmp.ge.s32.totalorder %v579_v34, %v469_v6 }
  0x9d   :  { %vm327_vm11 = vmxor %vm319_vm13, %vm434_vm5 }
  0x9e   :  { %vm335_vm7 = vmand %vm291_vm14, %vm327_vm11  ;;  %vm1330_vm14 = vcmp.lt.s32.totalorder %v579_v34, %v473_v8 }
  0x9f   :  { %vm363_vm1 = vmand %vm1327_vm10, %vm1326_vm8  ;;  %vm1333_vm8 = vcmp.ge.s32.totalorder %v579_v34, %v475_v9 }
  0xa0   :  { %vm371_vm9 = vmxor %vm363_vm1, %vm434_vm5 }
  0xa1   :  { %vm379_vm0 = vmand %vm335_vm7, %vm371_vm9  ;;  %vm1332_vm7 = vcmp.lt.s32.totalorder %v579_v34, %v490_v10 }
  0xa2   :  { %v395_v58 = vsel %vm379_vm0, %v387_v57, 0.0  ;;  %vm64_vm4 = vmand %vm1329_vm12, %vm1328_vm3  ;;  %vm1334_vm0 = vcmp.lt.s32.totalorder %v579_v34, %v504_v13  ;;  %vm1335_vm3 = vcmp.ge.s32.totalorder %v579_v34, %v502_v12 }
  0xa3   :  { %403 = vst [vmem:[%s1251_s2 + $0x28] sm:$0xff] %v395_v58  ;;  %vm72_vm2 = vmxor %vm64_vm4, %vm434_vm5 }
  0xa4   :  { %vm100_vm15 = vmand %vm1331_vm6, %vm1330_vm14  ;;  %vm1336_vm14 = vcmp.lt.s32.totalorder %v579_v34, %v525_v18  ;;  %vm1337_vm6 = vcmp.ge.s32.totalorder %v579_v34, %v523_v17 }
  0xa5   :  { %vm108_vm13 = vmxor %vm100_vm15, %vm434_vm5 }
  0xa6   :  { %vm116_vm11 = vmand %vm72_vm2, %vm108_vm13 }
  0xa7   :  { %vm144_vm10 = vmand %vm1333_vm8, %vm1332_vm7  ;;  %vm1338_vm7 = vcmp.lt.s32.totalorder %v579_v34, %v548_v25  ;;  %vm1339_vm8 = vcmp.ge.s32.totalorder %v579_v34, %v546_v24 }
  0xa8   :  { %vm152_vm1 = vmxor %vm144_vm10, %vm434_vm5 }
  0xa9   :  { %vm160_vm9 = vmand %vm116_vm11, %vm152_vm1 }
  0xaa   :  { %vm188_vm12 = vmand %vm1335_vm3, %vm1334_vm0  ;;  %vm1340_vm0 = vcmp.lt.s32.totalorder %v579_v34, %v558_v28  ;;  %vm1341_vm3 = vcmp.ge.s32.totalorder %v579_v34, %v556_v27 }
  0xab   :  { %vm196_vm4 = vmxor %vm188_vm12, %vm434_vm5 }
  0xac   :  { %vm204_vm2 = vmand %vm160_vm9, %vm196_vm4 }
  0xad   :  { %vm232_vm15 = vmand %vm1337_vm6, %vm1336_vm14  ;;  %vm1342_vm14 = vcmp.lt.s32.totalorder %v579_v34, %v570_v31  ;;  %vm1343_vm6 = vcmp.ge.s32.totalorder %v579_v34, %v561_v29 }
  0xae   :  { %vm240_vm13 = vmxor %vm232_vm15, %vm434_vm5 }
  0xaf   :  { %vm248_vm11 = vmand %vm204_vm2, %vm240_vm13 }
  0xb0   :  { %vm276_vm10 = vmand %vm1339_vm8, %vm1338_vm7  ;;  %vm1344_vm7 = vcmp.lt.s32.totalorder %v839_v44, %v471_v7  ;;  %vm1345_vm8 = vcmp.ge.s32.totalorder %v839_v44, %v467_v5 }
  0xb1   :  { %vm284_vm1 = vmxor %vm276_vm10, %vm434_vm5 }
  0xb2   :  { %vm292_vm9 = vmand %vm248_vm11, %vm284_vm1 }
  0xb3   :  { %vm320_vm12 = vmand %vm1341_vm3, %vm1340_vm0  ;;  %vm1347_vm0 = vcmp.ge.s32.totalorder %v839_v44, %v469_v6 }
  0xb4   :  { %vm328_vm4 = vmxor %vm320_vm12, %vm434_vm5 }
  0xb5   :  { %vm336_vm2 = vmand %vm292_vm9, %vm328_vm4  ;;  %vm1346_vm9 = vcmp.lt.s32.totalorder %v839_v44, %v473_v8 }
  0xb6   :  { %vm364_vm15 = vmand %vm1343_vm6, %vm1342_vm14  ;;  %vm1349_vm14 = vcmp.ge.s32.totalorder %v839_v44, %v475_v9 }
  0xb7   :  { %vm372_vm13 = vmxor %vm364_vm15, %vm434_vm5 }
  0xb8   :  { %vm380_vm11 = vmand %vm336_vm2, %vm372_vm13  ;;  %vm1348_vm2 = vcmp.lt.s32.totalorder %v839_v44, %v490_v10 }
  0xb9   :  { %v396_v60 = vsel %vm380_vm11, %v388_v59, 0.0  ;;  %vm65_vm10 = vmand %vm1345_vm8, %vm1344_vm7  ;;  %vm1350_vm11 = vcmp.lt.s32.totalorder %v839_v44, %v504_v13  ;;  %vm1351_vm7 = vcmp.ge.s32.totalorder %v839_v44, %v502_v12 }
  0xba   :  { %404 = vst [vmem:[%s1251_s2 + $0x30] sm:$0xff] %v396_v60  ;;  %vm73_vm1 = vmxor %vm65_vm10, %vm434_vm5 }
  0xbb   :  { %vm101_vm3 = vmand %vm1347_vm0, %vm1346_vm9  ;;  %vm1352_vm9 = vcmp.lt.s32.totalorder %v839_v44, %v525_v18  ;;  %vm1353_vm0 = vcmp.ge.s32.totalorder %v839_v44, %v523_v17 }
  0xbc   :  { %vm109_vm12 = vmxor %vm101_vm3, %vm434_vm5 }
  0xbd   :  { %vm117_vm4 = vmand %vm73_vm1, %vm109_vm12 }
  0xbe   :  { %vm145_vm6 = vmand %vm1349_vm14, %vm1348_vm2  ;;  %vm1354_vm2 = vcmp.lt.s32.totalorder %v839_v44, %v548_v25  ;;  %vm1355_vm14 = vcmp.ge.s32.totalorder %v839_v44, %v546_v24 }
  0xbf   :  { %vm153_vm15 = vmxor %vm145_vm6, %vm434_vm5 }
  0xc0   :  { %vm161_vm13 = vmand %vm117_vm4, %vm153_vm15 }
  0xc1   :  { %vm189_vm8 = vmand %vm1351_vm7, %vm1350_vm11  ;;  %vm1356_vm11 = vcmp.lt.s32.totalorder %v839_v44, %v558_v28  ;;  %vm1357_vm7 = vcmp.ge.s32.totalorder %v839_v44, %v556_v27 }
  0xc2   :  { %vm197_vm10 = vmxor %vm189_vm8, %vm434_vm5 }
  0xc3   :  { %vm205_vm1 = vmand %vm161_vm13, %vm197_vm10 }
  0xc4   :  { %vm233_vm3 = vmand %vm1353_vm0, %vm1352_vm9  ;;  %vm1358_vm9 = vcmp.lt.s32.totalorder %v839_v44, %v570_v31  ;;  %vm1359_vm0 = vcmp.ge.s32.totalorder %v839_v44, %v561_v29 }
  0xc5   :  { %vm241_vm12 = vmxor %vm233_vm3, %vm434_vm5 }
  0xc6   :  { %vm249_vm4 = vmand %vm205_vm1, %vm241_vm12 }
  0xc7   :  { %vm277_vm6 = vmand %vm1355_vm14, %vm1354_vm2 }
  0xc8   :  { %vm285_vm15 = vmxor %vm277_vm6, %vm434_vm5 }
  0xc9   :  { %vm293_vm13 = vmand %vm249_vm4, %vm285_vm15 }
  0xca   :  { %vm321_vm8 = vmand %vm1357_vm7, %vm1356_vm11 }
  0xcb   :  { %vm329_vm10 = vmxor %vm321_vm8, %vm434_vm5 }
  0xcc   :  { %vm337_vm1 = vmand %vm293_vm13, %vm329_vm10 }
  0xcd   :  { %vm365_vm3 = vmand %vm1359_vm0, %vm1358_vm9 }
  0xce   :  { %vm373_vm12 = vmxor %vm365_vm3, %vm434_vm5 }
  0xcf   :  { %vm381_vm4 = vmand %vm337_vm1, %vm373_vm12 }
  0xd0   :  { %v397_v62 = vsel %vm381_vm4, %v389_v61, 0.0 }
  0xd1   :  { %405 = vst [vmem:[%s1251_s2 + $0x38] sm:$0xff] %v397_v62 }

</bundles_post_ra>
